<compile_context>
chip_gen: v5e
topology: v5e:2x2
jax: 0.10.0
libtpu: 0.0.40
codegen_flags: <defaults>
</compile_context>

<pallas_src>
import jax
import jax.numpy as jnp
from jax.experimental import pallas as pl
from jax.experimental.pallas import tpu as pltpu

# Synthetic environment-derived sizes (env.get_state(0) flattened, len(env.actions)).
IN_FEATURES = 32   # int(np.prod(env.get_state(0).shape)) -- synthetic choice
HIDDEN = 64
NUM_ACTIONS = 8    # len(env.actions) -- synthetic choice
A_PAD = 128        # lane-dense padded action dimension


def _mlp_q_kernel(x_ref, w1_ref, b1_ref, w2_ref, b2_ref, q_ref):
    """Two MXU matmuls + EUP tanh; lane-dense [tile, 128] f32 q writeback."""
    x = x_ref[...]                                              # [B, F]
    h = jnp.dot(x, w1_ref[...], preferred_element_type=jnp.float32)
    h = jnp.tanh(h + b1_ref[...])                               # [B, H]
    q = jnp.dot(h, w2_ref[...], preferred_element_type=jnp.float32)
    q_ref[...] = (q + b2_ref[...]).astype(q_ref.dtype)          # [B, A_PAD]


def _mlp_act_kernel(x_ref, w1_ref, b1_ref, w2_ref, b2_ref, a_ref):
    """Actions-only variant for act(): same MLP, fused argmax, no q writeback."""
    x = x_ref[...]
    h = jnp.dot(x, w1_ref[...], preferred_element_type=jnp.float32)
    h = jnp.tanh(h + b1_ref[...])
    q = jnp.dot(h, w2_ref[...], preferred_element_type=jnp.float32) + b2_ref[...]
    # Argmax over the real actions only; padded lanes masked to -inf.
    lane = jax.lax.broadcasted_iota(jnp.int32, q.shape, 1)
    q_m = jnp.where(lane < NUM_ACTIONS, q, -jnp.inf)
    q_max = jnp.max(q_m, axis=1, keepdims=True)
    # First index attaining the max (matches torch.argmax tie-breaking).
    idx = jnp.where(q_m == q_max, lane, jnp.int32(A_PAD))
    a_ref[...] = jnp.min(idx, axis=1, keepdims=True).astype(jnp.int32)


def init_params(key):
    """PyTorch-Linear-style init U(-1/sqrt(fan_in), +1/sqrt(fan_in)).

    The output projection is zero-padded to A_PAD=128 lanes ONCE here, so the
    per-call forward path does no padding work (perf-review item).
    """
    k1, k2, k3, k4 = jax.random.split(key, 4)
    bound1 = 1.0 / (IN_FEATURES ** 0.5)
    bound2 = 1.0 / (HIDDEN ** 0.5)
    w1 = jax.random.uniform(k1, (IN_FEATURES, HIDDEN), jnp.float32, -bound1, bound1)
    b1 = jax.random.uniform(k2, (1, HIDDEN), jnp.float32, -bound1, bound1)
    w2 = jax.random.uniform(k3, (HIDDEN, NUM_ACTIONS), jnp.float32, -bound2, bound2)
    b2 = jax.random.uniform(k4, (1, NUM_ACTIONS), jnp.float32, -bound2, bound2)
    w2p = jnp.pad(w2, ((0, 0), (0, A_PAD - NUM_ACTIONS)))
    b2p = jnp.pad(b2, ((0, 0), (0, A_PAD - NUM_ACTIONS)))
    return w1, b1, w2p, b2p


def _network_forward(x, w1, b1, w2p, b2p, *, block_b=1024):
    """x: [B, F] f32 -> q_values [B, NUM_ACTIONS] f32."""
    B, F = x.shape
    H = w1.shape[1]

    if B <= block_b:
        # Small batch: single un-gridded call, whole problem resident in VMEM
        # (no pipeline prologue/epilogue, no per-step overhead).
        q_pad = pl.pallas_call(
            _mlp_q_kernel,
            out_shape=jax.ShapeDtypeStruct((B, A_PAD), jnp.float32),
            in_specs=[pl.BlockSpec(memory_space=pltpu.VMEM)] * 5,
            out_specs=pl.BlockSpec(memory_space=pltpu.VMEM),
        )(x, w1, b1, w2p, b2p)
        return q_pad[:, :NUM_ACTIONS]

    # Batched path: cdiv grid over the batch (>= 2 tiles here, so v7x's two
    # TensorCores both get work). Ragged B is padded up to a full last tile
    # instead of falling back to an ungridded whole-array call.
    nb = pl.cdiv(B, block_b)
    bp = nb * block_b
    if bp != B:
        x = jnp.pad(x, ((0, bp - B), (0, 0)))

    flops = 2 * bp * (F * H + H * A_PAD)
    bytes_accessed = 4 * (bp * F + F * H + H + H * A_PAD + A_PAD + bp * A_PAD)
    q_pad = pl.pallas_call(
        _mlp_q_kernel,
        out_shape=jax.ShapeDtypeStruct((bp, A_PAD), jnp.float32),
        grid=(nb,),
        in_specs=[
            pl.BlockSpec((block_b, F), lambda i: (i, 0)),
            # Weights/biases map to block (0, 0) every step -> VMEM-resident.
            pl.BlockSpec((F, H), lambda i: (0, 0)),
            pl.BlockSpec((1, H), lambda i: (0, 0)),
            pl.BlockSpec((H, A_PAD), lambda i: (0, 0)),
            pl.BlockSpec((1, A_PAD), lambda i: (0, 0)),
        ],
        out_specs=pl.BlockSpec((block_b, A_PAD), lambda i: (i, 0)),
        compiler_params=pltpu.CompilerParams(
            dimension_semantics=("parallel",)),
        cost_estimate=pl.CostEstimate(flops=flops,
                                      transcendentals=bp * H,
                                      bytes_accessed=bytes_accessed),
    )(x, w1, b1, w2p, b2p)
    return q_pad[:B, :NUM_ACTIONS]


def _act(obs, w1, b1, w2p, b2p):
    """Mirror of Network.act: greedy action for one observation.

    Returns a device int32 scalar (no q writeback, no extra argmax op);
    caller may int() it (that is the only host sync, as in torch .item()).
    """
    x = obs.reshape(1, -1).astype(jnp.float32)
    a = pl.pallas_call(
        _mlp_act_kernel,
        out_shape=jax.ShapeDtypeStruct((1, 1), jnp.int32),
        in_specs=[pl.BlockSpec(memory_space=pltpu.VMEM)] * 5,
        out_specs=pl.BlockSpec(memory_space=pltpu.VMEM),
    )(x, w1, b1, w2p, b2p)
    return a[0, 0]


# Jitted entry points (perf-review item: one launch per forward / act call).
network_forward = jax.jit(_network_forward, static_argnames=("block_b",))
act = jax.jit(_act)


if __name__ == "__main__":
    key = jax.random.PRNGKey(0)
    k_x, k_p, k_big = jax.random.split(key, 3)

    w1, b1, w2p, b2p = init_params(k_p)
    w2 = w2p[:, :NUM_ACTIONS]
    b2 = b2p[:, :NUM_ACTIONS]

    # --- small-batch (ungridded) forward ---
    B = 2
    x = jax.random.normal(k_x, (B, IN_FEATURES), jnp.float32)
    q_values = network_forward(x, w1, b1, w2p, b2p)
    jax.block_until_ready(q_values)

    ref = jnp.tanh(x @ w1 + b1) @ w2 + b2
    assert q_values.shape == (B, NUM_ACTIONS)
    assert jnp.allclose(q_values, ref, atol=1e-5, rtol=1e-5)

    # --- batched (gridded, "parallel") forward with a ragged batch ---
    BB = 320                       # not a multiple of block_b -> cdiv + pad path
    xb = jax.random.normal(k_big, (BB, IN_FEATURES), jnp.float32)
    qb = network_forward(xb, w1, b1, w2p, b2p, block_b=128)   # grid of 3 tiles
    jax.block_until_ready(qb)

    refb = jnp.tanh(xb @ w1 + b1) @ w2 + b2
    assert qb.shape == (BB, NUM_ACTIONS)
    assert jnp.allclose(qb, refb, atol=1e-5, rtol=1e-5)

    # --- act(): single obs, actions-only kernel, fused argmax ---
    a0 = act(x[0], w1, b1, w2p, b2p)
    jax.block_until_ready(a0)
    assert int(a0) == int(jnp.argmax(ref[0]))

    print("KERNEL_OK")
</pallas_src>

<mosaic_0001>
module attributes {stable_mosaic.version = 11 : i64} {
  func.func @_mlp_q_kernel(%arg0: memref<2x32xf32, #tpu.memory_space<vmem>>, %arg1: memref<32x64xf32, #tpu.memory_space<vmem>>, %arg2: memref<1x64xf32, #tpu.memory_space<vmem>>, %arg3: memref<64x128xf32, #tpu.memory_space<vmem>>, %arg4: memref<1x128xf32, #tpu.memory_space<vmem>>, %arg5: memref<2x128xf32, #tpu.memory_space<vmem>>) attributes {dimension_semantics = [], scalar_prefetch = 0 : i64, scratch_operands = 0 : i64, tpu.core_type = #tpu.core_type<tc>} {
    %c0 = arith.constant 0 : index
    %c0_0 = arith.constant 0 : index
    %0 = vector.load %arg0[%c0, %c0_0] : memref<2x32xf32, #tpu.memory_space<vmem>>, vector<2x32xf32>
    %c0_1 = arith.constant 0 : index
    %c0_2 = arith.constant 0 : index
    %1 = vector.load %arg1[%c0_1, %c0_2] : memref<32x64xf32, #tpu.memory_space<vmem>>, vector<32x64xf32>
    %cst = arith.constant dense<0.000000e+00> : vector<2x64xf32>
    %2 = tpu.matmul %0, %1, %cst {dimension_numbers = #tpu.dot_dimension_numbers<[1], [0], [0], [1], [0, 0, 1, 1], [], []>} : vector<2x32xf32>, vector<32x64xf32>, vector<2x64xf32> -> vector<2x64xf32>
    %c0_3 = arith.constant 0 : index
    %c0_4 = arith.constant 0 : index
    %3 = vector.load %arg2[%c0_3, %c0_4] : memref<1x64xf32, #tpu.memory_space<vmem>>, vector<1x64xf32>
    %4 = vector.broadcast %3 : vector<1x64xf32> to vector<2x64xf32>
    %5 = arith.addf %2, %4 : vector<2x64xf32>
    %6 = math.tanh %5 : vector<2x64xf32>
    %c0_5 = arith.constant 0 : index
    %c0_6 = arith.constant 0 : index
    %7 = vector.load %arg3[%c0_5, %c0_6] : memref<64x128xf32, #tpu.memory_space<vmem>>, vector<64x128xf32>
    %cst_7 = arith.constant dense<0.000000e+00> : vector<2x128xf32>
    %8 = tpu.matmul %6, %7, %cst_7 {dimension_numbers = #tpu.dot_dimension_numbers<[1], [0], [0], [1], [0, 0, 1, 1], [], []>} : vector<2x64xf32>, vector<64x128xf32>, vector<2x128xf32> -> vector<2x128xf32>
    %c0_8 = arith.constant 0 : index
    %c0_9 = arith.constant 0 : index
    %9 = vector.load %arg4[%c0_8, %c0_9] : memref<1x128xf32, #tpu.memory_space<vmem>>, vector<1x128xf32>
    %10 = vector.broadcast %9 : vector<1x128xf32> to vector<2x128xf32>
    %11 = arith.addf %8, %10 : vector<2x128xf32>
    %c0_10 = arith.constant 0 : index
    %c0_11 = arith.constant 0 : index
    %12 = vector.load %arg5[%c0_10, %c0_11] : memref<2x128xf32, #tpu.memory_space<vmem>>, vector<2x128xf32>
    tpu.vector_store %arg5[%c0_10, %c0_11], %11 {strides = array<i32>} : memref<2x128xf32, #tpu.memory_space<vmem>>, vector<2x128xf32>,
    return
  }
}

</mosaic_0001>

<bundles_post_ra>
// kernel: _network_forward.1
= control target key start
LH: loop header
LB: loop body
LE: loop exit
PB: predicated region body
PF: predicated region fallthrough
CT: control target
= control target key end

     0   :  { %10 = vsyncpa [#allocation3], 0  ;;  %s323_s0 = inlined_call_operand.hbm [shape: f32[2,32], index: 0, kind: input, shape index: {}]   ;;  %s324_s1 = inlined_call_operand.hbm [shape: f32[32,64], index: 1, kind: input, shape index: {}]   ;;  %s325_s2 = inlined_call_operand.vmem [shape: f32[1,64], index: 2, kind: input, shape index: {}]   ;;  %s326_s3 = inlined_call_operand.hbm [shape: f32[64,128], index: 3, kind: input, shape index: {}]   ;;  %s327_s4 = inlined_call_operand.vmem [shape: f32[1,128], index: 4, kind: input, shape index: {}]   ;;  %s328_s5 = inlined_call_operand.hbm [shape: f32[2,128], index: 5, kind: output, shape index: {}]  }
   0x1   :  { %11 = vsyncpa [#allocation6], 0  ;;  %s28_s20 = sshll.u32 %s324_s1, 4  ;;  %s29_s20 = int_to_ptr.hbm [resolvable:$true] %s28_s20 }
   0x2   :  { %12 = vsyncpa [#allocation4], 0  ;;  %s269_s21 = smov [#allocation5]   ;;  %s18_s25 = sshll.u32 %s323_s0, 4  ;;  %s19_s25 = int_to_ptr.hbm [resolvable:$true] %s18_s25 }
   0x3   :  { %s30_s22 = sshll.u32 %s269_s21, 4  ;;  %s270_s26 = smov 128   ;;  %s31_s22 = int_to_ptr.vmem [resolvable:$true] %s30_s22 }
   0x4   :  { %s271_s27 = smov 8   ;;  %s272_s28 = smov [#allocation2]  }
   0x5   :  { %36 = dma.hbm_to_vmem [thread:$0]  %s29_s20, 512, %s31_s22, [#allocation6], %s270_s26, %s270_s26, %s271_s27  }
   0x6   :  { %s20_s29 = sshll.u32 %s272_s28, 4  ;;  %s43_s7 = sshll.u32 %s326_s3, 4  ;;  %s21_s29 = int_to_ptr.vmem [resolvable:$true] %s20_s29  ;;  %s44_s7 = int_to_ptr.hbm [resolvable:$true] %s43_s7 }
   0x7   :  { %23 = dma.hbm_to_vmem [thread:$0]  %s19_s25, 32, %s21_s29, [#allocation3]  }
   0x8   :  { %s273_s1 = smov [#allocation7]  }
   0x9   :  { %s45_s8 = sshll.u32 %s273_s1, 4  ;;  %s46_s8 = int_to_ptr.vmem [resolvable:$true] %s45_s8 }
   0xa   :  { %51 = dma.hbm_to_vmem [thread:$0]  %s44_s7, 1024, %s46_s8, [#allocation6], %s270_s26, %s270_s26, %s271_s27  }
   0xb   :  { %263 = dma.done.wait [#allocation3], 32  }
   0xc   :  { %264 = vsyncadd [#allocation3], 4294967264 }
   0xd   :  { %265 = dma.done.wait [#allocation6], 1536  }
   0xe   :  { %266 = vsyncadd [#allocation6], 4294965760  ;;  %v70_v0 = vld [vmem:[#allocation5 + $0x18] sm:$0xff]  ;;  %v69_v1 = vld [vmem:[#allocation5 + $0x10] sm:$0xff]  ;;  %vm75_vm0 = vcmask 261120   ;;  %vm112_vm1 = vcmask 523264  }
   0xf   :  { %91 = vmatpush.msra.mxu0 %v70_v0  ;;  %v107_v2 = vld [vmem:[#allocation7 + $0x38] sm:$0xff]  ;;  %v68_v3 = vld [vmem:[#allocation5 + $0x8] sm:$0xff]  ;;  %v106_v4 = vld [vmem:[#allocation7 + $0x30] sm:$0xff]  ;;  %s274_s11 = smov [#allocation8]   ;;  %s144_s15 = sshll.u32 %s328_s5, 4  ;;  %s145_s15 = int_to_ptr.hbm [resolvable:$true] %s144_s15 }
  0x10   :  { %124 = vmatpush.msra.mxu1 %v107_v2  ;;  %v105_v5 = vld [vmem:[#allocation7 + $0x28] sm:$0xff]  ;;  %v67_v6 = vld [vmem:[#allocation5] sm:$0xff]  ;;  %v66_v7 = vld [vmem:[#allocation2] sm:$0x3]  ;;  %s142_s12 = sshll.u32 %s274_s11, 4  ;;  %s143_s12 = int_to_ptr.vmem [resolvable:$true] %s142_s12 }
  0x11   :  { %92 = vmatpush.msra.mxu0 %v69_v1  ;;  %v104_v8 = vld [vmem:[#allocation7 + $0x20] sm:$0xff]  ;;  %v103_v9 = vld [vmem:[#allocation7 + $0x18] sm:$0xff]  ;;  %v102_v10 = vld [vmem:[#allocation7 + $0x10] sm:$0xff] }
  0x12   :  { %125 = vmatpush.msra.mxu1 %v106_v4  ;;  %v101_v11 = vld [vmem:[#allocation7 + $0x8] sm:$0xff]  ;;  %v100_v12 = vld [vmem:[#allocation7] sm:$0xff]  ;;  %v163_v13 = vld [vmem:[%s325_s2] ss:$0 sm:$0xff] }
  0x13   :  { %93 = vmatpush.msra.mxu0 %v68_v3  ;;  %v164_v17 = vld [vmem:[%s327_s4] ss:$0 sm:$0xff] }
  0x14   :  { %126 = vmatpush.msra.mxu1 %v105_v5 }
  0x15   :  { %94 = vmatpush.msra.mxu0 %v67_v6 }
  0x16   :  { %155 = vmatmul.msk.f32.vlgmr.msra.gmra.mxu0 %vm75_vm0, %v66_v7  ;;  %127 = vmatpush.msra.mxu1 %v104_v8 }
  0x18   :  { %128 = vmatpush.msra.mxu1 %v103_v9 }
  0x1a   :  { %129 = vmatpush.msra.mxu1 %v102_v10 }
  0x1c   :  { %130 = vmatpush.msra.mxu1 %v101_v11 }
  0x1e   :  { %131 = vmatpush.msra.mxu1 %v100_v12 }
  0x93   :  { %v96_v14 = vpop.f32.mrf.mxu0 }
  0x94   :  { %v97_v15 = vadd.f32 %v163_v13, %v96_v14 }
  0x96   :  { %165 = vtanh.f32 %v97_v15 }
  0x9c   :  { %v166_v16 = vpop.eup %165 }
  0x9d   :  { %156 = vmatmul.msk.f32.vlgmr.msra.gmra.mxu1 %vm112_vm1, %v166_v16 }
 0x11a   :  { %v133_v18 = vpop.f32.mrf.mxu1 }
 0x11b   :  { %v134_v19 = vadd.f32 %v164_v17, %v133_v18 }
 0x11d   :  { %136 = vst [vmem:[#allocation8] sm:$0x3] %v134_v19 }
 0x11e   :  { %147 = dma.vmem_to_hbm [thread:$0]  %s143_s12, 32, %s145_s15, [#allocation4]  }
 0x11f   :  { %267 = dma.done.wait [#allocation4], 32  }
 0x120   :  { %268 = vsyncadd [#allocation4], 4294967264 }
 0x121   :  { %152 = vsyncpa [#allocation3], 1 }
 0x122   :  { %153 = vsyncpa [#allocation6], 1 }
 0x123   :  { %154 = vsyncpa [#allocation4], 1 }

</bundles_post_ra>
